<compile_context>
chip_gen: v7x
topology: tpu7x:2x2x1
jax: 0.10.0
libtpu: 0.0.40
codegen_flags: <defaults>
</compile_context>

<pallas_src>
import functools

import jax
import jax.numpy as jnp
from jax.experimental import pallas as pl
from jax.experimental.pallas import tpu as pltpu


def _copy_kernel(x_ref, o_ref):
    # Identity copy of the current VMEM tile (unsqueeze performs no compute).
    o_ref[...] = x_ref[...]


def _pick_cols(total: int):
    """Lane-dense column count for the flattened 2D view, or None.

    Returns the largest of {2048, 1024, 512, 256, 128} dividing `total`, so
    every block's last dim is a multiple of 128 (full `vst` stores, no lane
    padding).  Returns None when `total` is not a multiple of 128: a
    lane-starved copy (cols < 128) would pay masked `vst.msk` stores and up to
    128x VMEM lane padding, so the caller uses a pure metadata reshape instead.
    """
    for c in (2048, 1024, 512, 256, 128):
        if total % c == 0:
            return c
    return None


def _tiling_params():
    """(target block bytes, vmem_limit_bytes or None) for the current TPU."""
    kind = ""
    try:
        kind = jax.devices()[0].device_kind.lower()
    except Exception:
        pass
    if "v7" in kind or "7x" in kind:
        # ~3.2 TB/s HBM: a 2 MiB block is only ~1.3 us of DMA, so grow blocks
        # to keep the ~0.35 us per-grid-step overhead negligible.  Pipeline
        # footprint 4 x 6 MiB = 24 MiB; raise scoped VMEM for headroom
        # (physical VMEM is 64 MiB, default scoped limit 32 MiB).
        return 6 * 1024 * 1024, 40 * 1024 * 1024
    if "v6" in kind:
        # ~86% of HBM roofline at ~4 MiB blocks; 16 MiB pipeline footprint
        # stays under the 32 MiB scoped-VMEM default.
        return 4 * 1024 * 1024, None
    # v5e / unknown: 2 MiB blocks already put the per-step overhead <7% at
    # ~0.82 TB/s, and 4 x 2 MiB = 8 MiB stays under the 16 MiB scoped default.
    return 2 * 1024 * 1024, None


@functools.partial(jax.jit, static_argnames=("item_index",), donate_argnums=(0,))
def pallas_unsqueeze(x: jax.Array, item_index: int) -> jax.Array:
    """Equivalent of torch.Tensor.unsqueeze(item_index).

    NOTE: `x` is donated (its buffer is reused for the output), so the caller
    must not use `x` after this call.
    """
    ndim = x.ndim
    # torch.unsqueeze accepts dims in [-(ndim+1), ndim]
    idx = item_index if item_index >= 0 else item_index + ndim + 1
    if not (0 <= idx <= ndim):
        raise ValueError("unsqueeze index out of range")

    out_shape = list(x.shape)
    out_shape.insert(idx, 1)

    total = int(x.size)
    cols = _pick_cols(total) if total else None
    if cols is None:
        # Empty or lane-starved element count: unsqueeze is metadata-only, so
        # return the exact reshape rather than a narrow-store Pallas copy.
        return x.reshape(out_shape)

    itemsize = x.dtype.itemsize
    rows = total // cols
    x2 = x.reshape(rows, cols)

    # dtype-aware minimum sublane multiple: f32 -> 8, bf16 -> 16, int8/fp8 -> 32.
    min_sub = {4: 8, 2: 16, 1: 32}.get(itemsize, 8)

    target_bytes, vmem_limit = _tiling_params()
    tile_rows = max(min_sub,
                    (target_bytes // (cols * itemsize)) // min_sub * min_sub)
    tile_rows = min(tile_rows, rows)  # full row extent for small inputs (legal)

    grid = (pl.cdiv(rows, tile_rows),)

    cp_kwargs = dict(dimension_semantics=("parallel",))
    if vmem_limit is not None:
        cp_kwargs["vmem_limit_bytes"] = vmem_limit

    y2 = pl.pallas_call(
        _copy_kernel,
        out_shape=jax.ShapeDtypeStruct((rows, cols), x.dtype),
        grid=grid,
        in_specs=[pl.BlockSpec((tile_rows, cols), lambda i: (i, 0))],
        out_specs=pl.BlockSpec((tile_rows, cols), lambda i: (i, 0)),
        # With the jit-level donation above this alias is honored without a
        # defensive copy: the kernel is a single in-place 1R+1W HBM stream.
        input_output_aliases={0: 0},
        cost_estimate=pl.CostEstimate(
            flops=0, transcendentals=0, bytes_accessed=2 * total * itemsize),
        compiler_params=pltpu.CompilerParams(**cp_kwargs),
    )(x2)

    return y2.reshape(out_shape)


if __name__ == "__main__":
    key = jax.random.PRNGKey(0)
    # Small NCHW feature map, consistent with the module's typical use.
    x = jax.random.normal(key, (2, 4, 16, 16), dtype=jnp.float32)

    # References (and a second input) are materialized BEFORE the donating
    # calls, because pallas_unsqueeze consumes its argument's buffer.
    ref_pos = jnp.expand_dims(x, 1)
    ref_neg = jnp.expand_dims(x, -1)
    x_neg = jnp.copy(x)
    jax.block_until_ready((ref_pos, ref_neg, x_neg))

    # Unsqueeze(item_index=1): [2,4,16,16] -> [2,1,4,16,16]
    y = pallas_unsqueeze(x, 1)
    jax.block_until_ready(y)
    assert y.shape == ref_pos.shape == (2, 1, 4, 16, 16), y.shape
    assert y.dtype == ref_pos.dtype
    assert jnp.array_equal(y, ref_pos)

    # Negative index, like torch allows: [2,4,16,16] -> [2,4,16,16,1]
    y_neg = pallas_unsqueeze(x_neg, -1)
    jax.block_until_ready(y_neg)
    assert y_neg.shape == (2, 4, 16, 16, 1), y_neg.shape
    assert jnp.array_equal(y_neg, ref_neg)

    print("KERNEL_OK")
</pallas_src>

<mosaic_0001>
module attributes {stable_mosaic.version = 11 : i64} {
  func.func @_copy_kernel(%arg0: i32, %arg1: memref<1x2048xf32, #tpu.memory_space<vmem>>, %arg2: memref<1x2048xf32, #tpu.memory_space<vmem>>) attributes {dimension_semantics = [#tpu.dimension_semantics<parallel>], iteration_bounds = array<i64: 1>, scalar_prefetch = 0 : i64, scratch_operands = 0 : i64, tpu.core_type = #tpu.core_type<tc>, window_params = [{transform_indices = @transform_0, window_bounds = array<i64: 1, 2048>}, {transform_indices = @transform_1, window_bounds = array<i64: 1, 2048>}]} {
    %c0 = arith.constant 0 : index
    %c0_0 = arith.constant 0 : index
    %0 = vector.load %arg1[%c0, %c0_0] : memref<1x2048xf32, #tpu.memory_space<vmem>>, vector<1x2048xf32>
    %c0_1 = arith.constant 0 : index
    %c0_2 = arith.constant 0 : index
    %1 = vector.load %arg2[%c0_1, %c0_2] : memref<1x2048xf32, #tpu.memory_space<vmem>>, vector<1x2048xf32>
    tpu.vector_store %arg2[%c0_1, %c0_2], %0 {strides = array<i32>} : memref<1x2048xf32, #tpu.memory_space<vmem>>, vector<1x2048xf32>,
    return
  }
  func.func @transform_0(%arg0: i32) -> (i32, i32) {
    %c0_i32 = arith.constant 0 : i32
    %c0_i32_0 = arith.constant 0 : i32
    return %arg0, %c0_i32 : i32, i32
  }
  func.func @transform_1(%arg0: i32) -> (i32, i32) {
    %c0_i32 = arith.constant 0 : i32
    %c0_i32_0 = arith.constant 0 : i32
    return %arg0, %c0_i32 : i32, i32
  }
}

</mosaic_0001>

<bundles_post_ra>
// kernel: pallas_unsqueeze.1
= control target key start
LH: loop header
LB: loop body
LE: loop exit
PB: predicated region body
PF: predicated region fallthrough
CT: control target
= control target key end

     0   :  { %s38_s0 = inlined_call_operand.vmem [shape: f32[1,2048], index: 0, kind: input, shape index: {}, may-alias: {0,1}]   ;;  %s39_s1 = inlined_call_operand.vmem [shape: f32[1,2048], index: 1, kind: output, shape index: {}, may-alias: {0,1}]  }
   0x1   :  { %v8_v0 = vld [vmem:[%s38_s0] sm:$0xff]  ;;  %v9_v1 = vld [vmem:[%s38_s0 + $0x8] sm:$0xff] }
   0x2   :  { %10 = vst [vmem:[%s39_s1] sm:$0xff] %v8_v0  ;;  %11 = vst [vmem:[%s39_s1 + $0x8] sm:$0xff] %v9_v1 }

</bundles_post_ra>
